<compile_context>
chip_gen: v7x
topology: tpu7x:2x2x1
jax: 0.10.0
libtpu: 0.0.40
codegen_flags: <defaults>
</compile_context>

<pallas_src>
import numpy as np
import jax
import jax.numpy as jnp
from jax.experimental import pallas as pl
from jax.experimental.pallas import tpu as pltpu


# -----------------------------------------------------------------------------
# Parameter ("weight") construction — deterministic, mirrors init_ft_matrix.
# -----------------------------------------------------------------------------
def init_ft_matrix(qlen: int, klen: int, same_length: bool = True) -> np.ndarray:
    """Returns the REAL part of the complex ft_matrix, shape (qlen, klen), f32."""
    flen = klen - qlen + 1
    outer = np.outer(np.arange(qlen), np.arange(flen)).astype(np.float64)
    ft = np.exp(2.0 * np.pi * 1j * outer / flen) / np.sqrt(flen)  # (qlen, flen) c128
    # F.pad(ft, (klen - flen, 0)): pad last dim on the left with zeros.
    ft = np.pad(ft, ((0, 0), (klen - flen, 0)))
    # Per-row roll: row i shifted left by (qlen - i - 1).
    for i in range(qlen):
        ft[i] = np.roll(ft[i], -(qlen - i - 1))
    # tril with diagonal offset (klen - qlen)
    ft = np.tril(ft, klen - qlen)
    if same_length:
        ft = np.triu(ft, 0)
    # Only the real part contributes to the forward output (x is real).
    return np.real(ft).astype(np.float32)


# -----------------------------------------------------------------------------
# Tile selection with an explicit VMEM budget (v7x: 64 MiB physical).
# -----------------------------------------------------------------------------
_VMEM_TILE_BUDGET = 40 * 1024 * 1024   # tile working set cap (safe on v7x)
_VMEM_LIMIT_BYTES = 56 * 1024 * 1024   # scoped limit: > 16/32 MiB defaults, < v7x physical


def _divisor_tiles(dim, candidates):
    tiles = [c for c in candidates if dim >= c and dim % c == 0]
    tiles.append(dim)  # full-dim fallback (valid: block == full array dim)
    return sorted(set(tiles))


def _tile_vmem_bytes(L, tk, tn, in_bytes, out_bytes, n_x_bufs):
    ft_buf = 2 * L * tk * in_bytes            # double-buffered ft tiles
    x_buf = n_x_bufs * tk * tn * in_bytes     # x tiles (2- or 3-deep buffered)
    acc = L * tn * 4                          # f32 accumulator scratch
    out_buf = 2 * L * tn * out_bytes          # double-buffered output tiles
    return ft_buf + x_buf + acc + out_buf


def _pick_tiles(L, M, n_dim, in_bytes, out_bytes, n_x_bufs):
    """Largest (tn, tk) fitting the VMEM budget; prefer >=2 n-steps (v7x 2 TCs)."""
    tn_cands = _divisor_tiles(n_dim, (2048, 1024, 512, 256, 128))
    tk_cands = _divisor_tiles(M, (1024, 512, 256, 128))

    def tn_order(tn):                       # (splits across 2 TensorCores?, size)
        return ((n_dim // tn) >= 2, tn)

    for tn in sorted(tn_cands, key=tn_order, reverse=True):
        for tk in sorted(tk_cands, reverse=True):
            if _tile_vmem_bytes(L, tk, tn, in_bytes, out_bytes, n_x_bufs) <= _VMEM_TILE_BUDGET:
                return tn, tk
    # TODO(synk): for very large L (L*tn accumulator no longer fits VMEM)
    # re-introduce an L grid axis; not needed for this module's typical tgt_len.
    return min(tn_cands), min(tk_cands)


# -----------------------------------------------------------------------------
# Kernel: (L, tk) @ (tk, tn) with f32 VMEM accumulator; reduction axis is the
# LAST grid axis (index `red_axis`).  L is fully resident per grid step.
# -----------------------------------------------------------------------------
def _make_kernel(red_axis):
    def kernel(ft_ref, x_ref, o_ref, acc_ref):
        k = pl.program_id(red_axis)

        @pl.when(k == 0)
        def _():
            acc_ref[...] = jnp.zeros_like(acc_ref)

        acc_ref[...] += jnp.dot(ft_ref[...], x_ref[...],
                                preferred_element_type=jnp.float32)

        @pl.when(k == pl.num_programs(red_axis) - 1)
        def _():
            o_ref[...] = acc_ref[...].astype(o_ref.dtype)

    return kernel


# -----------------------------------------------------------------------------
# Wrapper
# -----------------------------------------------------------------------------
def fnetar_attention(x, p, ft_real, qlen: int, add_position: bool, *,
                     compute_dtype=jnp.float32, out_dtype=jnp.float32,
                     x_buffers: int = 2):
    """x, p: (B, M, D); ft_real: (tgt_len, tgt_len+mem_len) f32.

    Returns (B, qlen, D) in out_dtype."""
    B, M, D = x.shape
    L = int(qlen)

    # One-time constant prep: slice, fold in 1/sqrt(M), cast.
    ft = (jnp.asarray(ft_real)[-L:, -M:] * (1.0 / np.sqrt(M))).astype(compute_dtype)

    # x + p fused in the wrapper (f32 add BEFORE any low-precision cast); single operand.
    xin = (x + p) if add_position else x
    # TODO(synk): dropout is identity here (eval mode parity only).
    xin = xin.astype(compute_dtype)

    in_bytes = jnp.dtype(compute_dtype).itemsize
    out_bytes = jnp.dtype(out_dtype).itemsize
    x_pipeline = {} if x_buffers == 2 else {"pipeline_mode": pl.Buffered(x_buffers)}
    n_total = B * D
    cost = pl.CostEstimate(
        flops=2 * L * M * n_total,
        transcendentals=0,
        bytes_accessed=(L * M + M * n_total) * in_bytes + L * n_total * out_bytes)

    if D % 128 == 0:
        # --- Natural-layout path: no wrapper transpose / output un-fold.
        #     grid = (B, D/td, M/tk); batch + feature axes are "parallel".
        td, tk = _pick_tiles(L, M, D, in_bytes, out_bytes, x_buffers)
        grid = (B, D // td, M // tk)
        out = pl.pallas_call(
            _make_kernel(2),
            out_shape=jax.ShapeDtypeStruct((B, L, D), out_dtype),
            grid=grid,
            in_specs=[
                pl.BlockSpec((L, tk), lambda b, j, k: (0, k)),           # ft: L resident
                pl.BlockSpec((pl.Squeezed(), tk, td),
                             lambda b, j, k: (b, k, j), **x_pipeline),   # x streamed once
            ],
            out_specs=pl.BlockSpec((pl.Squeezed(), L, td), lambda b, j, k: (b, 0, j)),
            scratch_shapes=[pltpu.VMEM((L, td), jnp.float32)],
            compiler_params=pltpu.CompilerParams(
                dimension_semantics=("parallel", "parallel", "arbitrary"),
                vmem_limit_bytes=_VMEM_LIMIT_BYTES),
            cost_estimate=cost,
        )(ft, xin)
        return out

    # --- Folded path (small D): lane-dense output via N = B*D fold.
    N = B * D
    x_t = jnp.transpose(xin, (1, 0, 2)).reshape(M, N)
    tn, tk = _pick_tiles(L, M, N, in_bytes, out_bytes, x_buffers)
    grid = (N // tn, M // tk)
    out = pl.pallas_call(
        _make_kernel(1),
        out_shape=jax.ShapeDtypeStruct((L, N), out_dtype),
        grid=grid,
        in_specs=[
            pl.BlockSpec((L, tk), lambda j, k: (0, k)),                  # ft: L resident
            pl.BlockSpec((tk, tn), lambda j, k: (k, j), **x_pipeline),   # x streamed once
        ],
        out_specs=pl.BlockSpec((L, tn), lambda j, k: (0, j)),
        scratch_shapes=[pltpu.VMEM((L, tn), jnp.float32)],
        compiler_params=pltpu.CompilerParams(
            dimension_semantics=("parallel", "arbitrary"),
            vmem_limit_bytes=_VMEM_LIMIT_BYTES),
        cost_estimate=cost,
    )(ft, x_t)
    # Un-fold batch: (L, B*D) -> (B, L, D).
    return jnp.transpose(out.reshape(L, B, D), (1, 0, 2))


# -----------------------------------------------------------------------------
# Pure-JAX reference (matches PyTorch forward semantics, dropout = identity).
# -----------------------------------------------------------------------------
def fnetar_reference(x, p, ft_real, qlen: int, add_position: bool):
    if add_position:
        x = x + p
    M = x.shape[1]
    ft = jnp.asarray(ft_real)[-qlen:, -M:]
    return jnp.einsum("lm,bmd->bld", ft, x) / np.sqrt(M)


if __name__ == "__main__":
    # Module config (small): tgt_len=8, mem_len=8 -> klen=16
    tgt_len, mem_len = 8, 8
    qlen = tgt_len
    klen = tgt_len + mem_len
    ft_real = init_ft_matrix(qlen=tgt_len, klen=klen, same_length=True)

    key = jax.random.PRNGKey(0)
    kx, kp, kx2, kp2 = jax.random.split(key, 4)

    # ---- Small-D (folded lane-dense) path: B=2, M=16, D=32.
    B, M, D = 2, klen, 32
    x = jax.random.normal(kx, (B, M, D), dtype=jnp.float32)
    p = jax.random.normal(kp, (B, M, D), dtype=jnp.float32)

    out = jax.block_until_ready(fnetar_attention(x, p, ft_real, qlen, add_position=True))
    ref = fnetar_reference(x, p, ft_real, qlen, add_position=True)
    np.testing.assert_allclose(np.asarray(out), np.asarray(ref), rtol=1e-5, atol=1e-5)

    out_np = jax.block_until_ready(fnetar_attention(x, p, ft_real, qlen, add_position=False))
    ref_np = fnetar_reference(x, p, ft_real, qlen, add_position=False)
    np.testing.assert_allclose(np.asarray(out_np), np.asarray(ref_np), rtol=1e-5, atol=1e-5)

    # ---- Natural-layout path (D multiple of 128: no wrapper transposes).
    D2 = 128
    x2 = jax.random.normal(kx2, (B, M, D2), dtype=jnp.float32)
    p2 = jax.random.normal(kp2, (B, M, D2), dtype=jnp.float32)
    out2 = jax.block_until_ready(fnetar_attention(x2, p2, ft_real, qlen, add_position=True))
    ref2 = fnetar_reference(x2, p2, ft_real, qlen, add_position=True)
    np.testing.assert_allclose(np.asarray(out2), np.asarray(ref2), rtol=1e-5, atol=1e-5)

    # ---- bf16 compute (f32 MXU accumulation, f32 output) — looser tolerance.
    out_bf = jax.block_until_ready(
        fnetar_attention(x2, p2, ft_real, qlen, add_position=True,
                         compute_dtype=jnp.bfloat16))
    np.testing.assert_allclose(np.asarray(out_bf), np.asarray(ref2), rtol=2e-2, atol=2e-2)

    # ---- bf16 compute + bf16 output (halved writeback).
    out_bf16 = jax.block_until_ready(
        fnetar_attention(x2, p2, ft_real, qlen, add_position=True,
                         compute_dtype=jnp.bfloat16, out_dtype=jnp.bfloat16))
    np.testing.assert_allclose(np.asarray(jnp.asarray(out_bf16, jnp.float32)),
                               np.asarray(ref2), rtol=3e-2, atol=3e-2)

    print("KERNEL_OK")
</pallas_src>

<mosaic_0001>
module attributes {stable_mosaic.version = 11 : i64} {
  func.func @kernel(%arg0: i32, %arg1: i32, %arg2: memref<8x16xf32, #tpu.memory_space<vmem>>, %arg3: memref<16x64xf32, #tpu.memory_space<vmem>>, %arg4: memref<8x64xf32, #tpu.memory_space<vmem>>, %arg5: memref<8x64xf32, #tpu.memory_space<vmem>>) attributes {dimension_semantics = [#tpu.dimension_semantics<parallel>, #tpu.dimension_semantics<arbitrary>], iteration_bounds = array<i64: 1, 1>, scalar_prefetch = 0 : i64, scratch_operands = 1 : i64, tpu.core_type = #tpu.core_type<tc>, window_params = [{transform_indices = @transform_0, window_bounds = array<i64: 8, 16>}, {transform_indices = @transform_1, window_bounds = array<i64: 16, 64>}, {transform_indices = @transform_2, window_bounds = array<i64: 8, 64>}]} {
    %c0_i32 = arith.constant 0 : i32
    %0 = arith.cmpi eq, %arg1, %c0_i32 : i32
    %1 = arith.extui %0 : i1 to i32
    %c0_i32_0 = arith.constant 0 : i32
    %2 = arith.cmpi ne, %1, %c0_i32_0 : i32
    scf.if %2 {
      %cst_10 = arith.constant 0.000000e+00 : f32
      %12 = vector.broadcast %cst_10 : f32 to vector<8x64xf32>
      %c0_11 = arith.constant 0 : index
      %c0_12 = arith.constant 0 : index
      %13 = vector.load %arg5[%c0_11, %c0_12] : memref<8x64xf32, #tpu.memory_space<vmem>>, vector<8x64xf32>
      tpu.vector_store %arg5[%c0_11, %c0_12], %12 {strides = array<i32>} : memref<8x64xf32, #tpu.memory_space<vmem>>, vector<8x64xf32>,
    } else {
    }
    %c0 = arith.constant 0 : index
    %c0_1 = arith.constant 0 : index
    %3 = vector.load %arg5[%c0, %c0_1] : memref<8x64xf32, #tpu.memory_space<vmem>>, vector<8x64xf32>
    %c0_2 = arith.constant 0 : index
    %c0_3 = arith.constant 0 : index
    %4 = vector.load %arg2[%c0_2, %c0_3] : memref<8x16xf32, #tpu.memory_space<vmem>>, vector<8x16xf32>
    %c0_4 = arith.constant 0 : index
    %c0_5 = arith.constant 0 : index
    %5 = vector.load %arg3[%c0_4, %c0_5] : memref<16x64xf32, #tpu.memory_space<vmem>>, vector<16x64xf32>
    %cst = arith.constant dense<0.000000e+00> : vector<8x64xf32>
    %6 = tpu.matmul %4, %5, %cst {dimension_numbers = #tpu.dot_dimension_numbers<[1], [0], [0], [1], [0, 0, 1, 1], [], []>} : vector<8x16xf32>, vector<16x64xf32>, vector<8x64xf32> -> vector<8x64xf32>
    %7 = arith.addf %3, %6 : vector<8x64xf32>
    %c0_6 = arith.constant 0 : index
    %c0_7 = arith.constant 0 : index
    %8 = vector.load %arg5[%c0_6, %c0_7] : memref<8x64xf32, #tpu.memory_space<vmem>>, vector<8x64xf32>
    tpu.vector_store %arg5[%c0_6, %c0_7], %7 {strides = array<i32>} : memref<8x64xf32, #tpu.memory_space<vmem>>, vector<8x64xf32>,
    %c0_i32_8 = arith.constant 0 : i32
    %9 = arith.cmpi eq, %arg1, %c0_i32_8 : i32
    %10 = arith.extui %9 : i1 to i32
    %c0_i32_9 = arith.constant 0 : i32
    %11 = arith.cmpi ne, %10, %c0_i32_9 : i32
    scf.if %11 {
      %c0_10 = arith.constant 0 : index
      %c0_11 = arith.constant 0 : index
      %12 = vector.load %arg5[%c0_10, %c0_11] : memref<8x64xf32, #tpu.memory_space<vmem>>, vector<8x64xf32>
      %c0_12 = arith.constant 0 : index
      %c0_13 = arith.constant 0 : index
      %13 = vector.load %arg4[%c0_12, %c0_13] : memref<8x64xf32, #tpu.memory_space<vmem>>, vector<8x64xf32>
      tpu.vector_store %arg4[%c0_12, %c0_13], %12 {strides = array<i32>} : memref<8x64xf32, #tpu.memory_space<vmem>>, vector<8x64xf32>,
    } else {
    }
    return
  }
  func.func @transform_0(%arg0: i32, %arg1: i32) -> (i32, i32) {
    %c0_i32 = arith.constant 0 : i32
    %c0_i32_0 = arith.constant 0 : i32
    return %c0_i32, %arg1 : i32, i32
  }
  func.func @transform_1(%arg0: i32, %arg1: i32) -> (i32, i32) {
    %c0_i32 = arith.constant 0 : i32
    return %arg1, %arg0 : i32, i32
  }
  func.func @transform_2(%arg0: i32, %arg1: i32) -> (i32, i32) {
    %c0_i32 = arith.constant 0 : i32
    %c0_i32_0 = arith.constant 0 : i32
    return %c0_i32, %arg0 : i32, i32
  }
}

</mosaic_0001>

<bundles_post_ra>
// kernel: tpu_custom_call.1
= control target key start
LH: loop header
LB: loop body
LE: loop exit
PB: predicated region body
PF: predicated region fallthrough
CT: control target
= control target key end

     0   :  { %7 = vsyncpa [#allocation4], 0  ;;  %s309_s0 = inlined_call_operand.hbm [shape: f32[8,16], index: 0, kind: input, shape index: {}]   ;;  %s310_s1 = inlined_call_operand.hbm [shape: f32[16,64], index: 1, kind: input, shape index: {}]   ;;  %s311_s2 = inlined_call_operand.hbm [shape: f32[8,64], index: 2, kind: output, shape index: {}]  }
   0x1   :  { %8 = vsyncpa [#allocation7], 0 }
   0x2   :  { %9 = vsyncpa [#allocation5], 0  ;;  %s240_s9 = smov [#allocation3]   ;;  %s241_s11 = smov [#allocation6]  }
   0x3   :  { %s16_s10 = sshll.u32 %s240_s9, 4  ;;  %s25_s12 = sshll.u32 %s241_s11, 4  ;;  %s17_s10 = int_to_ptr.vmem [resolvable:$true] %s16_s10  ;;  %s263_s12 = int_to_ptr.vmem [resolvable:$true] %s25_s12 }
   0x4   :  { %s168_s15 = scalar_lea.hbm %s309_s0, 128 }
   0x5   :  { %p169_p0 = scmp.ne.s32.totalorder %s309_s0, %s168_s15  ;;  %p172_p1 = scmp.lt.u32.totalorder %s168_s15, %s309_s0 }
   0x7   :  { %p174_p2 = pnand %p172_p1, %p169_p0 }
   0x9   :  { %177 = shalt.err (!%p174_p2)
}
   0xa   :  { %s178_s20 = scalar_lea.vmem %s17_s10, 128  ;;  %p183_p4 = scmp.lt.s32.totalorder %s17_s10, %s17_s10 }
   0xb   :  { %p179_p3 = scmp.ne.s32.totalorder %s17_s10, %s178_s20  ;;  %p184_p5 = scmp.lt.s32.totalorder %s178_s20, %s178_s20 }
   0xd   :  { %p185_p6 = por %p184_p5, %p183_p4 }
   0xf   :  { %p186_p7 = pnand %p185_p6, %p179_p3 }
  0x11   :  { %189 = shalt.err (!%p186_p7)
}
  0x12   :  { %19 = dma.hbm_to_vmem [thread:$0]  %s309_s0, 128, %s17_s10, [#allocation4]  }
  0x13   :  { %s190_s25 = scalar_lea.hbm %s310_s1, 256 }
  0x14   :  { %p191_p8 = scmp.ne.s32.totalorder %s310_s1, %s190_s25  ;;  %p194_p9 = scmp.lt.u32.totalorder %s190_s25, %s310_s1 }
  0x16   :  { %p196_p10 = pnand %p194_p9, %p191_p8 }
  0x18   :  { %199 = shalt.err (!%p196_p10)
}
  0x19   :  { %s200_s30 = scalar_lea.vmem %s263_s12, 256  ;;  %p205_p12 = scmp.lt.s32.totalorder %s263_s12, %s263_s12 }
  0x1a   :  { %p201_p11 = scmp.ne.s32.totalorder %s263_s12, %s200_s30  ;;  %p206_p13 = scmp.lt.s32.totalorder %s200_s30, %s200_s30 }
  0x1c   :  { %p207_p0 = por %p206_p13, %p205_p12 }
  0x1e   :  { %p208_p1 = pnand %p207_p0, %p201_p11 }
  0x20   :  { %211 = shalt.err (!%p208_p1)
}
  0x21   :  { %s242_s0 = smov 128   ;;  %s243_s3 = smov 8  }
  0x22   :  { %31 = dma.hbm_to_vmem [thread:$0]  %s310_s1, 256, %s263_s12, [#allocation7], %s242_s0, %s242_s0, %s243_s3  }
  0x23   :  { %234 = dma.done.wait [#allocation4], 128  }
  0x24   :  { %235 = vsyncadd [#allocation4], 4294967168 }
  0x25   :  { %236 = dma.done.wait [#allocation7], 256  }
  0x26   :  { %237 = vsyncadd [#allocation7], 4294967040  ;;  %vm42_vm0 = vcmask 523264   ;;  %v244_v0 = vmov 0.0|0.0   ;;  %v245_v1 = vmov 0.0   ;;  %vm246_vm1 = vmmov 0  }
  0x27   :  { %157 = vmatprep.subr.bf16.mxu0 %v244_v0  ;;  %43 = vst.msk [vmem:[#allocation2] sm:$0xff] %vm42_vm0, %v245_v1  ;;  %154 = vmatprep.mubr.msk.f32.mxu0 %vm246_vm1, %v245_v1  ;;  %v46_v2 = vld [vmem:[#allocation6] sm:$0xff]  ;;  %v47_v3 = vld [vmem:[#allocation6 + $0x8] sm:$0xff]  ;;  %v45_v5 = vld [vmem:[#allocation3] sm:$0xff]  ;;  %vm48_vm2 = vcmask 130048   ;;  %s247_s1 = smov [#allocation8]  }
  0x28   :  { %v158_v4 = vpack.c.bf16 %v47_v3, %v46_v2  ;;  %s136_s6 = sshll.u32 %s247_s1, 4  ;;  %s137_s6 = int_to_ptr.vmem [resolvable:$true] %s136_s6 }
  0x29   :  { %s212_s7 = scalar_lea.vmem %s137_s6, 128  ;;  %p217_p3 = scmp.lt.s32.totalorder %s137_s6, %s137_s6 }
  0x2a   :  { %159 = vmatpush3.bf16.msra.mxu0 %v158_v4  ;;  %p213_p2 = scmp.ne.s32.totalorder %s137_s6, %s212_s7  ;;  %p218_p4 = scmp.lt.s32.totalorder %s212_s7, %s212_s7 }
  0x2c   :  { %p219_p5 = por %p218_p4, %p217_p3 }
  0x2d   :  { %155 = vmatmul.mubr.msk.f32.vlgmr.msra.gmra.mrb[0].mxu0 %vm48_vm2, %v45_v5 }
  0x2e   :  { %v44_v6 = vld [vmem:[#allocation2] sm:$0xff]  ;;  %p220_p6 = pnand %p219_p5, %p213_p2 }
 0x100   :  { %v118_v7 = vpop.f32.mrb[0].mxu0 }
 0x101   :  { %v122_v8 = vadd.f32 %v118_v7, %v44_v6  ;;  %v156_v9 = vpop.f32.mrb[1].mxu0 }
 0x103   :  { %124 = vst.msk [vmem:[#allocation2] sm:$0xff] %vm42_vm0, %v122_v8 }
 0x10a   :  { %v128_v10 = vld [vmem:[#allocation2] sm:$0xff] }
 0x10b   :  { %129 = vst.msk [vmem:[#allocation8] sm:$0xff] %vm42_vm0, %v128_v10 }
 0x10c   :  { %223 = shalt.err (!%p220_p6)
}
 0x10d   :  { %s224_s10 = scalar_lea.hbm %s311_s2, 128 }
 0x10e   :  { %p225_p7 = scmp.ne.s32.totalorder %s311_s2, %s224_s10  ;;  %p228_p8 = scmp.lt.u32.totalorder %s224_s10, %s311_s2 }
 0x110   :  { %p230_p9 = pnand %p228_p8, %p225_p7 }
 0x112   :  { %233 = shalt.err (!%p230_p9)
}
 0x113   :  { %139 = dma.vmem_to_hbm [thread:$0]  %s137_s6, 128, %s311_s2, [#allocation5]  }
 0x114   :  { %238 = dma.done.wait [#allocation5], 128  }
 0x115   :  { %239 = vsyncadd [#allocation5], 4294967168 }
 0x116   :  { %143 = vsyncpa [#allocation4], 1 }
 0x117   :  { %144 = vsyncpa [#allocation7], 1 }
 0x118   :  { %145 = vsyncpa [#allocation5], 1 }

</bundles_post_ra>
